<compile_context>
chip_gen: v7x
topology: tpu7x:2x2x1
jax: 0.10.0
libtpu: 0.0.40
codegen_flags: <defaults>
</compile_context>

<pallas_src>
import jax
import jax.numpy as jnp
from jax.experimental import pallas as pl
from jax.experimental.pallas import tpu as pltpu

_K = 4            # in_features  of Linear(4, 4)
_N = 4            # out_features of Linear(4, 4)
_LANES = 128
_G = _LANES // _K  # 32 samples packed per 128-lane row


def _fused_affine_kernel(w_ref, b_ref, x_ref, o_ref):
    """One lane-dense streaming tile: o = x @ W_blockdiag + b_tiled.

    x_ref: (TR, 128) VMEM tile — 32 samples per row (4 contiguous lanes each)
    w_ref: (128, 128) f32 VMEM — block-diagonal: 32 copies of the folded 4x4 weight
    b_ref: (1, 128)  f32 VMEM — folded bias tiled over the 32 lane groups
    o_ref: (TR, 128) VMEM tile — same packing as x
    """
    acc = jnp.dot(
        x_ref[...].astype(jnp.float32),
        w_ref[...],
        preferred_element_type=jnp.float32,
        precision=jax.lax.Precision.HIGHEST,
    )
    o_ref[...] = (acc + b_ref[...]).astype(o_ref.dtype)


def _choose_tile_rows(r_raw: int) -> int:
    """Rows (of 128 lanes) per grid step.

    Aim for ~8 grid steps (megacore split + pipelining headroom on v7x), keep the
    per-step DMA >= 512 rows (256 KiB/buffer) when there is enough data so the
    ~0.35us per-step pipeline overhead amortizes, and cap at 4096 rows
    (2 MiB in + 2 MiB out per buffer; ~8 MiB double-buffered) so the working set
    fits comfortably in scoped VMEM on v5e/v6e/v7x.
    """
    tr = -(-r_raw // 8)          # ~8 grid steps
    tr = -(-tr // 8) * 8         # multiple of 8 sublanes
    tr = max(tr, 8)
    if r_raw >= 1024:
        tr = max(tr, 512)
    return min(tr, 4096)


@jax.jit
def mymodule_forward(x, w1, b1, w2, b2):
    """x: [M, 4]. w1/w2: [4, 4] (PyTorch Linear layout [out, in]). b1/b2: [4]."""
    M, K = x.shape
    assert K == _K and _LANES % K == 0

    # One-time algebraic fold (tiny XLA ops on 4x4 params).
    wc = (2.0 * (w1 + w2)).T.astype(jnp.float32)          # (K, N): [in, out]
    bc = (2.0 * (b1 + b2)).astype(jnp.float32)            # (N,)

    # Block-diagonal replication of the 4x4 mix across 32 lane groups + tiled bias.
    wbig = jnp.kron(jnp.eye(_G, dtype=jnp.float32), wc)   # (128, 128)
    bbig = jnp.tile(bc, _G).reshape(1, _LANES)            # (1, 128)

    # Free lane-dense view: [M, 4] -> [R, 128]; pad batch up to a tile multiple.
    r_raw = -(-M // _G)
    tr = _choose_tile_rows(r_raw)
    r_pad = -(-r_raw // tr) * tr
    m_pad = r_pad * _G

    x_slab = x if m_pad == M else jnp.pad(x, ((0, m_pad - M), (0, 0)))
    x_slab = x_slab.reshape(r_pad, _LANES)                # no data movement

    out_slab = pl.pallas_call(
        _fused_affine_kernel,
        out_shape=jax.ShapeDtypeStruct((r_pad, _LANES), x.dtype),
        grid=(r_pad // tr,),
        in_specs=[
            pl.BlockSpec((_LANES, _LANES), lambda i: (0, 0)),  # weight (fetched once)
            pl.BlockSpec((1, _LANES), lambda i: (0, 0)),       # bias   (fetched once)
            pl.BlockSpec((tr, _LANES), lambda i: (i, 0)),      # x tile, lane dense
        ],
        out_specs=pl.BlockSpec((tr, _LANES), lambda i: (i, 0)),
        compiler_params=pltpu.CompilerParams(
            dimension_semantics=("parallel",),                 # split M tiles over TCs
            vmem_limit_bytes=32 * 1024 * 1024,
        ),
    )(wbig, bbig, x_slab)

    out = out_slab.reshape(m_pad, _N)                          # free reshape back
    return out if m_pad == M else out[:M]


def mymodule_reference(x, w1, b1, w2, b2):
    y_a = x @ w1.T + b1
    y_b = x @ w2.T + b2
    return 2.0 * y_a + 2.0 * y_b


if __name__ == "__main__":
    key = jax.random.PRNGKey(0)
    kx, k1w, k1b, k2w, k2b, kx2 = jax.random.split(key, 6)

    # Parameters of mlp1.linear1 and mlp2.linear1 (the only ones used in forward).
    w1 = jax.random.normal(k1w, (4, 4), dtype=jnp.float32) * 0.5
    b1 = jax.random.normal(k1b, (4,), dtype=jnp.float32) * 0.1
    w2 = jax.random.normal(k2w, (4, 4), dtype=jnp.float32) * 0.5
    b2 = jax.random.normal(k2b, (4,), dtype=jnp.float32) * 0.1

    # Small batch (exercises the pad-to-tile path), shapes consistent with Linear(4,4).
    x_small = jax.random.normal(kx, (8, 4), dtype=jnp.float32)
    out_small = jax.block_until_ready(mymodule_forward(x_small, w1, b1, w2, b2))
    ref_small = mymodule_reference(x_small, w1, b1, w2, b2)
    assert out_small.shape == (8, 4), out_small.shape
    assert jnp.allclose(out_small, ref_small, atol=1e-5, rtol=1e-5), "mismatch (small)"

    # Ragged batch (multi-step grid + boundary padding).
    x_big = jax.random.normal(kx2, (1000, 4), dtype=jnp.float32)
    out_big = jax.block_until_ready(mymodule_forward(x_big, w1, b1, w2, b2))
    ref_big = mymodule_reference(x_big, w1, b1, w2, b2)
    assert out_big.shape == (1000, 4), out_big.shape
    assert jnp.allclose(out_big, ref_big, atol=1e-5, rtol=1e-5), "mismatch (ragged)"

    print("KERNEL_OK")
</pallas_src>

<mosaic_0001>
module attributes {stable_mosaic.version = 11 : i64} {
  func.func @_fused_affine_kernel(%arg0: i32, %arg1: memref<128x128xf32, #tpu.memory_space<vmem>>, %arg2: memref<1x128xf32, #tpu.memory_space<vmem>>, %arg3: memref<8x128xf32, #tpu.memory_space<vmem>>, %arg4: memref<8x128xf32, #tpu.memory_space<vmem>>) attributes {dimension_semantics = [#tpu.dimension_semantics<parallel>], iteration_bounds = array<i64: 1>, scalar_prefetch = 0 : i64, scratch_operands = 0 : i64, tpu.core_type = #tpu.core_type<tc>, window_params = [{pipeline_mode = #tpu.pipeline_mode<synchronous>, transform_indices = @transform_0, window_bounds = array<i64: 128, 128>}, {pipeline_mode = #tpu.pipeline_mode<synchronous>, transform_indices = @transform_1, window_bounds = array<i64: 1, 128>}, {transform_indices = @transform_2, window_bounds = array<i64: 8, 128>}, {transform_indices = @transform_3, window_bounds = array<i64: 8, 128>}]} {
    %c0 = arith.constant 0 : index
    %c0_0 = arith.constant 0 : index
    %0 = vector.load %arg3[%c0, %c0_0] : memref<8x128xf32, #tpu.memory_space<vmem>>, vector<8x128xf32>
    %c0_1 = arith.constant 0 : index
    %c0_2 = arith.constant 0 : index
    %1 = vector.load %arg1[%c0_1, %c0_2] : memref<128x128xf32, #tpu.memory_space<vmem>>, vector<128x128xf32>
    %cst = arith.constant dense<0.000000e+00> : vector<8x128xf32>
    %2 = tpu.matmul %0, %1, %cst {dimension_numbers = #tpu.dot_dimension_numbers<[1], [0], [0], [1], [0, 0, 1, 1], [], []>, precision = #tpu.contract_precision<fp32>} : vector<8x128xf32>, vector<128x128xf32>, vector<8x128xf32> -> vector<8x128xf32>
    %c0_3 = arith.constant 0 : index
    %c0_4 = arith.constant 0 : index
    %3 = vector.load %arg2[%c0_3, %c0_4] : memref<1x128xf32, #tpu.memory_space<vmem>>, vector<1x128xf32>
    %4 = vector.broadcast %3 : vector<1x128xf32> to vector<8x128xf32>
    %5 = arith.addf %2, %4 : vector<8x128xf32>
    %c0_5 = arith.constant 0 : index
    %c0_6 = arith.constant 0 : index
    %6 = vector.load %arg4[%c0_5, %c0_6] : memref<8x128xf32, #tpu.memory_space<vmem>>, vector<8x128xf32>
    tpu.vector_store %arg4[%c0_5, %c0_6], %5 {strides = array<i32>} : memref<8x128xf32, #tpu.memory_space<vmem>>, vector<8x128xf32>,
    return
  }
  func.func @transform_0(%arg0: i32) -> (i32, i32) {
    %c0_i32 = arith.constant 0 : i32
    %c0_i32_0 = arith.constant 0 : i32
    %c0_i32_1 = arith.constant 0 : i32
    return %c0_i32, %c0_i32_0 : i32, i32
  }
  func.func @transform_1(%arg0: i32) -> (i32, i32) {
    %c0_i32 = arith.constant 0 : i32
    %c0_i32_0 = arith.constant 0 : i32
    %c0_i32_1 = arith.constant 0 : i32
    return %c0_i32, %c0_i32_0 : i32, i32
  }
  func.func @transform_2(%arg0: i32) -> (i32, i32) {
    %c0_i32 = arith.constant 0 : i32
    %c0_i32_0 = arith.constant 0 : i32
    return %arg0, %c0_i32 : i32, i32
  }
  func.func @transform_3(%arg0: i32) -> (i32, i32) {
    %c0_i32 = arith.constant 0 : i32
    %c0_i32_0 = arith.constant 0 : i32
    return %arg0, %c0_i32 : i32, i32
  }
}

</mosaic_0001>

<bundles_post_ra>
// kernel: tile.8
= control target key start
LH: loop header
LB: loop body
LE: loop exit
PB: predicated region body
PF: predicated region fallthrough
CT: control target
= control target key end

     0   :  { %s40_s0 = inlined_call_operand.vmem [shape: f32[4], index: 0, kind: input, shape index: {}]   ;;  %s41_s1 = inlined_call_operand.vmem [shape: f32[32,4], index: 1, kind: output, shape index: {}]  }
   0x1   :  { %v4_v0 = vld [vmem:[%s40_s0] ss:$0 sm:$0xff] }
   0x2   :  { %5 = vst [vmem:[%s41_s1] sm:$0xff] %v4_v0  ;;  %12 = vst [vmem:[%s41_s1 + $0x8] sm:$0xff] %v4_v0 }
   0x3   :  { %13 = vst [vmem:[%s41_s1 + $0x10] sm:$0xff] %v4_v0  ;;  %14 = vst [vmem:[%s41_s1 + $0x18] sm:$0xff] %v4_v0 }

// kernel: tile.9
= control target key start
LH: loop header
LB: loop body
LE: loop exit
PB: predicated region body
PF: predicated region fallthrough
CT: control target
= control target key end

     0   :  { %s259_s10 = smov 124   ;;  %s260_s11 = smov 116   ;;  %vm3_vm0 = vcmask 31744   ;;  %vm9_vm1 = vcmask 1048544   ;;  %vm15_vm2 = vcmask 1015744   ;;  %vm21_vm3 = vcmask 982944   ;;  %s399_s0 = inlined_call_operand.vmem [shape: f32[32,4], index: 0, kind: input, shape index: {}]   ;;  %s400_s1 = inlined_call_operand.vmem [shape: f32[1,128], index: 1, kind: output, shape index: {}]  }
   0x1   :  { %v197_v0 = vld [vmem:[%s399_s0 + $0x1f] sm:$0x1]   ;;  %v199_v1 = vld [vmem:[%s399_s0 + $0x1d] sm:$0x1]   ;;  %v198_v2 = vld [vmem:[%s399_s0 + $0x1e] sm:$0x1]  }
   0x2   :  { %7 = vrot.lane.b32.xlu0 %v197_v0, %s259_s10  ;;  %19 = vrot.lane.b32.xlu1 %v199_v1, %s260_s11  ;;  %v200_v3 = vld [vmem:[%s399_s0 + $0x1c] sm:$0x1]   ;;  %s261_s16 = smov 120   ;;  %s262_s17 = smov 112   ;;  %v201_v4 = vld [vmem:[%s399_s0 + $0x1b] sm:$0x1]  }
   0x3   :  { %v202_v5 = vld [vmem:[%s399_s0 + $0x1a] sm:$0x1]   ;;  %s263_s22 = smov 108   ;;  %s264_s23 = smov 104   ;;  %v203_v6 = vld [vmem:[%s399_s0 + $0x19] sm:$0x1]  }
   0x4   :  { %v204_v7 = vld [vmem:[%s399_s0 + $0x18] sm:$0x1]   ;;  %s265_s28 = smov 100   ;;  %s266_s29 = smov 96   ;;  %v205_v8 = vld [vmem:[%s399_s0 + $0x17] sm:$0x1]  }
   0x5   :  { %v206_v9 = vld [vmem:[%s399_s0 + $0x16] sm:$0x1]   ;;  %v2_v10 = vld [vmem:[%s399_s0] sm:$0x1]   ;;  %s267_s7 = smov 92   ;;  %s268_s8 = smov 88  }
   0x6   :  { %13 = vrot.lane.b32.xlu0 %v198_v2, %s261_s16  ;;  %25 = vrot.lane.b32.xlu1 %v200_v3, %s262_s17  ;;  %4 = vst.msk [vmem:[#allocation0] sm:$0x1] %vm3_vm0, %v2_v10   ;;  %v207_v11 = vld [vmem:[%s399_s0 + $0x15] sm:$0x1]   ;;  %v208_v12 = vld [vmem:[%s399_s0 + $0x14] sm:$0x1]  }
   0x7   :  { %s269_s13 = smov 84   ;;  %s270_s14 = smov 80   ;;  %v209_v13 = vld [vmem:[%s399_s0 + $0x13] sm:$0x1]   ;;  %v210_v14 = vld [vmem:[%s399_s0 + $0x12] sm:$0x1]  }
   0x8   :  { %s271_s19 = smov 76   ;;  %s272_s20 = smov 72   ;;  %v211_v15 = vld [vmem:[%s399_s0 + $0x11] sm:$0x1]   ;;  %v212_v16 = vld [vmem:[%s399_s0 + $0x10] sm:$0x1]  }
   0x9   :  { %s273_s25 = smov 68   ;;  %s274_s26 = smov 64   ;;  %v213_v17 = vld [vmem:[%s399_s0 + $0xf] sm:$0x1]   ;;  %v214_v18 = vld [vmem:[%s399_s0 + $0xe] sm:$0x1]  }
   0xa   :  { %31 = vrot.lane.b32.xlu0 %v201_v4, %s263_s22  ;;  %37 = vrot.lane.b32.xlu1 %v202_v5, %s264_s23  ;;  %s275_s2 = smov 60   ;;  %s276_s3 = smov 56   ;;  %v215_v19 = vld [vmem:[%s399_s0 + $0xd] sm:$0x1]   ;;  %v216_v20 = vld [vmem:[%s399_s0 + $0xc] sm:$0x1]  }
   0xb   :  { %s278_s9 = smov 48   ;;  %v217_v21 = vld [vmem:[%s399_s0 + $0xb] sm:$0x1]   ;;  %v218_v22 = vld [vmem:[%s399_s0 + $0xa] sm:$0x1]   ;;  %s280_s15 = smov 40  }
   0xc   :  { %v219_v23 = vld [vmem:[%s399_s0 + $0x9] sm:$0x1]   ;;  %v220_v24 = vld [vmem:[%s399_s0 + $0x8] sm:$0x1]   ;;  %s282_s21 = smov 32   ;;  %s284_s27 = smov 24  }
   0xd   :  { %v221_v25 = vld [vmem:[%s399_s0 + $0x7] sm:$0x1]   ;;  %v222_v26 = vld [vmem:[%s399_s0 + $0x6] sm:$0x1]   ;;  %v223_v27 = vld [vmem:[%s399_s0 + $0x5] sm:$0x1]  }
   0xe   :  { %43 = vrot.lane.b32.xlu0 %v203_v6, %s265_s28  ;;  %49 = vrot.lane.b32.xlu1 %v204_v7, %s266_s29  ;;  %v224_v28 = vld [vmem:[%s399_s0 + $0x4] sm:$0x1]   ;;  %s286_s4 = smov 16   ;;  %v225_v29 = vld [vmem:[%s399_s0 + $0x3] sm:$0x1]   ;;  %s288_s10 = smov 8  }
   0xf   :  { %v226_v30 = vld [vmem:[%s399_s0 + $0x2] sm:$0x1]   ;;  %v227_v31 = vld [vmem:[%s399_s0 + $0x1] sm:$0x1]   ;;  %s289_s0 = smov 4   ;;  %vm27_vm4 = vcmask 950144  }
  0x10   :  { %vm33_vm5 = vcmask 917344   ;;  %vm39_vm6 = vcmask 884544   ;;  %vm45_vm7 = vcmask 851744   ;;  %vm51_vm8 = vcmask 818944  }
  0x11   :  { %vm57_vm9 = vcmask 786144   ;;  %vm63_vm10 = vcmask 753344   ;;  %vm69_vm11 = vcmask 720544   ;;  %vm75_vm12 = vcmask 687744  }
  0x12   :  { %55 = vrot.lane.b32.xlu0 %v205_v8, %s267_s7  ;;  %61 = vrot.lane.b32.xlu1 %v206_v9, %s268_s8  ;;  %s277_s8 = smov 52   ;;  %vm81_vm13 = vcmask 654944   ;;  %vm87_vm14 = vcmask 622144   ;;  %vm93_vm15 = vcmask 589344   ;;  %vm99_vm0 = vcmask 556544  }
  0x16   :  { %67 = vrot.lane.b32.xlu0 %v207_v11, %s269_s13  ;;  %73 = vrot.lane.b32.xlu1 %v208_v12, %s270_s14  ;;  %s279_s14 = smov 44  }
  0x1a   :  { %79 = vrot.lane.b32.xlu0 %v209_v13, %s271_s19  ;;  %85 = vrot.lane.b32.xlu1 %v210_v14, %s272_s20  ;;  %s281_s20 = smov 36  }
  0x1e   :  { %91 = vrot.lane.b32.xlu0 %v211_v15, %s273_s25  ;;  %97 = vrot.lane.b32.xlu1 %v212_v16, %s274_s26  ;;  %s283_s26 = smov 28  }
  0x22   :  { %103 = vrot.lane.b32.xlu0 %v213_v17, %s275_s2  ;;  %109 = vrot.lane.b32.xlu1 %v214_v18, %s276_s3  ;;  %s285_s3 = smov 20  }
  0x26   :  { %115 = vrot.lane.b32.xlu0 %v215_v19, %s277_s8  ;;  %121 = vrot.lane.b32.xlu1 %v216_v20, %s278_s9  ;;  %s287_s9 = smov 12  }
  0x2a   :  { %127 = vrot.lane.b32.xlu0 %v217_v21, %s279_s14  ;;  %133 = vrot.lane.b32.xlu1 %v218_v22, %s280_s15 }
  0x2e   :  { %139 = vrot.lane.b32.xlu0 %v219_v23, %s281_s20  ;;  %145 = vrot.lane.b32.xlu1 %v220_v24, %s282_s21 }
  0x32   :  { %151 = vrot.lane.b32.xlu0 %v221_v25, %s283_s26  ;;  %157 = vrot.lane.b32.xlu1 %v222_v26, %s284_s27 }
  0x36   :  { %163 = vrot.lane.b32.xlu0 %v223_v27, %s285_s3  ;;  %169 = vrot.lane.b32.xlu1 %v224_v28, %s286_s4 }
  0x3a   :  { %175 = vrot.lane.b32.xlu0 %v225_v29, %s287_s9  ;;  %181 = vrot.lane.b32.xlu1 %v226_v30, %s288_s10 }
  0x3e   :  { %187 = vrot.lane.b32.xlu0 %v227_v31, %s289_s0 }
  0x74   :  { %v8_v32 = vpop.permute.xlu0 %7   ;;  %v20_v33 = vpop.permute.xlu1 %19  }
  0x75   :  { %10 = vst.msk [vmem:[#allocation0] sm:$0x1] %vm9_vm1, %v8_v32   ;;  %vm105_vm1 = vcmask 523744  }
  0x78   :  { %v14_v34 = vpop.permute.xlu0 %13   ;;  %v26_v35 = vpop.permute.xlu1 %25  }
  0x79   :  { %16 = vst.msk [vmem:[#allocation0] sm:$0x1] %vm15_vm2, %v14_v34   ;;  %vm111_vm2 = vcmask 490944  }
  0x7a   :  { %22 = vst.msk [vmem:[#allocation0] sm:$0x1] %vm21_vm3, %v20_v33   ;;  %vm117_vm3 = vcmask 458144  }
  0x7b   :  { %28 = vst.msk [vmem:[#allocation0] sm:$0x1] %vm27_vm4, %v26_v35   ;;  %vm123_vm4 = vcmask 425344  }
  0x7c   :  { %v32_v36 = vpop.permute.xlu0 %31   ;;  %v38_v37 = vpop.permute.xlu1 %37  }
  0x7d   :  { %34 = vst.msk [vmem:[#allocation0] sm:$0x1] %vm33_vm5, %v32_v36   ;;  %vm129_vm5 = vcmask 392544  }
  0x7e   :  { %40 = vst.msk [vmem:[#allocation0] sm:$0x1] %vm39_vm6, %v38_v37   ;;  %vm135_vm6 = vcmask 359744  }
  0x80   :  { %v44_v38 = vpop.permute.xlu0 %43   ;;  %v50_v39 = vpop.permute.xlu1 %49  }
  0x81   :  { %46 = vst.msk [vmem:[#allocation0] sm:$0x1] %vm45_vm7, %v44_v38   ;;  %vm141_vm7 = vcmask 326944  }
  0x82   :  { %52 = vst.msk [vmem:[#allocation0] sm:$0x1] %vm51_vm8, %v50_v39   ;;  %vm147_vm8 = vcmask 294144  }
  0x84   :  { %v56_v40 = vpop.permute.xlu0 %55   ;;  %v62_v41 = vpop.permute.xlu1 %61  }
  0x85   :  { %58 = vst.msk [vmem:[#allocation0] sm:$0x1] %vm57_vm9, %v56_v40   ;;  %vm153_vm9 = vcmask 261344  }
  0x86   :  { %64 = vst.msk [vmem:[#allocation0] sm:$0x1] %vm63_vm10, %v62_v41   ;;  %vm159_vm10 = vcmask 228544  }
  0x88   :  { %v68_v42 = vpop.permute.xlu0 %67   ;;  %v74_v43 = vpop.permute.xlu1 %73  }
  0x89   :  { %70 = vst.msk [vmem:[#allocation0] sm:$0x1] %vm69_vm11, %v68_v42   ;;  %vm165_vm11 = vcmask 195744  }
  0x8a   :  { %76 = vst.msk [vmem:[#allocation0] sm:$0x1] %vm75_vm12, %v74_v43   ;;  %vm171_vm12 = vcmask 162944  }
  0x8c   :  { %v80_v44 = vpop.permute.xlu0 %79   ;;  %v86_v45 = vpop.permute.xlu1 %85  }
  0x8d   :  { %82 = vst.msk [vmem:[#allocation0] sm:$0x1] %vm81_vm13, %v80_v44   ;;  %vm177_vm13 = vcmask 130144  }
  0x8e   :  { %88 = vst.msk [vmem:[#allocation0] sm:$0x1] %vm87_vm14, %v86_v45   ;;  %vm183_vm14 = vcmask 97344  }
  0x90   :  { %v92_v46 = vpop.permute.xlu0 %91   ;;  %v98_v47 = vpop.permute.xlu1 %97  }
  0x91   :  { %94 = vst.msk [vmem:[#allocation0] sm:$0x1] %vm93_vm15, %v92_v46   ;;  %vm189_vm15 = vcmask 64544  }
  0x92   :  { %100 = vst.msk [vmem:[#allocation0] sm:$0x1] %vm99_vm0, %v98_v47  }
  0x94   :  { %v104_v48 = vpop.permute.xlu0 %103   ;;  %v110_v49 = vpop.permute.xlu1 %109  }
  0x95   :  { %106 = vst.msk [vmem:[#allocation0] sm:$0x1] %vm105_vm1, %v104_v48  }
  0x96   :  { %112 = vst.msk [vmem:[#allocation0] sm:$0x1] %vm111_vm2, %v110_v49  }
  0x98   :  { %v116_v50 = vpop.permute.xlu0 %115   ;;  %v122_v51 = vpop.permute.xlu1 %121  }
  0x99   :  { %118 = vst.msk [vmem:[#allocation0] sm:$0x1] %vm117_vm3, %v116_v50  }
  0x9a   :  { %124 = vst.msk [vmem:[#allocation0] sm:$0x1] %vm123_vm4, %v122_v51  }
  0x9c   :  { %v128_v52 = vpop.permute.xlu0 %127   ;;  %v134_v53 = vpop.permute.xlu1 %133  }
  0x9d   :  { %130 = vst.msk [vmem:[#allocation0] sm:$0x1] %vm129_vm5, %v128_v52  }
  0x9e   :  { %136 = vst.msk [vmem:[#allocation0] sm:$0x1] %vm135_vm6, %v134_v53  }
  0xa0   :  { %v140_v54 = vpop.permute.xlu0 %139   ;;  %v146_v55 = vpop.permute.xlu1 %145  }
  0xa1   :  { %142 = vst.msk [vmem:[#allocation0] sm:$0x1] %vm141_vm7, %v140_v54  }
  0xa2   :  { %148 = vst.msk [vmem:[#allocation0] sm:$0x1] %vm147_vm8, %v146_v55  }
  0xa4   :  { %v152_v56 = vpop.permute.xlu0 %151   ;;  %v158_v57 = vpop.permute.xlu1 %157  }
  0xa5   :  { %154 = vst.msk [vmem:[#allocation0] sm:$0x1] %vm153_vm9, %v152_v56  }
  0xa6   :  { %160 = vst.msk [vmem:[#allocation0] sm:$0x1] %vm159_vm10, %v158_v57  }
  0xa8   :  { %v164_v58 = vpop.permute.xlu0 %163   ;;  %v170_v59 = vpop.permute.xlu1 %169  }
  0xa9   :  { %166 = vst.msk [vmem:[#allocation0] sm:$0x1] %vm165_vm11, %v164_v58  }
  0xaa   :  { %172 = vst.msk [vmem:[#allocation0] sm:$0x1] %vm171_vm12, %v170_v59  }
  0xac   :  { %v176_v60 = vpop.permute.xlu0 %175   ;;  %v182_v61 = vpop.permute.xlu1 %181  }
  0xad   :  { %178 = vst.msk [vmem:[#allocation0] sm:$0x1] %vm177_vm13, %v176_v60  }
  0xae   :  { %184 = vst.msk [vmem:[#allocation0] sm:$0x1] %vm183_vm14, %v182_v61  }
  0xb0   :  { %v188_v62 = vpop.permute.xlu0 %187  }
  0xb1   :  { %190 = vst.msk [vmem:[#allocation0] sm:$0x1] %vm189_vm15, %v188_v62  }
  0xb8   :  { %v194_v63 = vld [vmem:[#allocation0] sm:$0x1] }
  0xb9   :  { %196 = vst [vmem:[%s400_s1] sm:$0x1] %v194_v63 }

// kernel: mymodule_forward.1
= control target key start
LH: loop header
LB: loop body
LE: loop exit
PB: predicated region body
PF: predicated region fallthrough
CT: control target
= control target key end

     0   :  { %v1154_v0 = vmov 0.0|0.0   ;;  %vm1155_vm0 = vmmov 0   ;;  %v1156_v8 = vmov 0.0   ;;  %s1481_s0 = inlined_call_operand.vmem [shape: f32[128,128], index: 0, kind: input, shape index: {}]   ;;  %s1482_s2 = inlined_call_operand.vmem [shape: f32[8,128], index: 2, kind: input, shape index: {}]   ;;  %s1483_s1 = inlined_call_operand.vmem [shape: f32[1,128], index: 1, kind: input, shape index: {}]   ;;  %s1484_s3 = inlined_call_operand.vmem [shape: f32[8,128], index: 3, kind: output, shape index: {}]  }
   0x1   :  { %997 = vmatprep.subr.bf16.mxu1 %v1154_v0  ;;  %1069 = vmatprep.subr.bf16.mxu0 %v1154_v0  ;;  %v15_v1 = vld [vmem:[%s1481_s0] sm:$0xff]  ;;  %v16_v2 = vld [vmem:[%s1481_s0 + $0x8] sm:$0xff]  ;;  %v17_v3 = vld [vmem:[%s1481_s0 + $0x10] sm:$0xff] }
   0x2   :  { %v39_v4 = vand.u32 4294901760, %v15_v1  ;;  %v42_v5 = vand.u32 4294901760, %v16_v2  ;;  %v18_v6 = vld [vmem:[%s1481_s0 + $0x18] sm:$0xff]  ;;  %v45_v7 = vand.u32 4294901760, %v17_v3  ;;  %819 = vmatprep.mubr.msk.f32.mxu1 %vm1155_vm0, %v1156_v8  ;;  %924 = vmatprep.mubr.msk.f32.mxu0 %vm1155_vm0, %v1156_v8  ;;  %v19_v10 = vld [vmem:[%s1481_s0 + $0x20] sm:$0xff]  ;;  %v20_v11 = vld [vmem:[%s1481_s0 + $0x28] sm:$0xff] }
   0x3   :  { %v48_v9 = vand.u32 4294901760, %v18_v6  ;;  %v51_v14 = vand.u32 4294901760, %v19_v10  ;;  %v54_v15 = vand.u32 4294901760, %v20_v11  ;;  %v21_v16 = vld [vmem:[%s1481_s0 + $0x30] sm:$0xff]  ;;  %v22_v17 = vld [vmem:[%s1481_s0 + $0x38] sm:$0xff]  ;;  %v1224_v21 = vld [vmem:[%s1481_s0 + $0x40] sm:$0xff] }
   0x4   :  { %v1201_v12 = vpack.c.bf16 %v42_v5, %v39_v4  ;;  %v57_v19 = vand.u32 4294901760, %v21_v16  ;;  %v60_v20 = vand.u32 4294901760, %v22_v17  ;;  %v1229_v22 = vld [vmem:[%s1481_s0 + $0x48] sm:$0xff]  ;;  %v63_v24 = vand.u32 4294901760, %v1224_v21  ;;  %v14_v26 = vld [vmem:[%s1482_s2] sm:$0xff]  ;;  %v1245_v27 = vld [vmem:[%s1481_s0 + $0x50] sm:$0xff] }
   0x5   :  { %v1205_v13 = vpack.c.bf16 %v48_v9, %v45_v7  ;;  %v1217_v18 = vpack.c.bf16 %v54_v15, %v51_v14  ;;  %v66_v25 = vand.u32 4294901760, %v1229_v22  ;;  %v1250_v28 = vld [vmem:[%s1481_s0 + $0x58] sm:$0xff]  ;;  %v1252_v29 = vsub.f32 %v15_v1, %v39_v4  ;;  %v1267_v35 = vld [vmem:[%s1481_s0 + $0x60] sm:$0xff]  ;;  %v1274_v36 = vld [vmem:[%s1481_s0 + $0x68] sm:$0xff] }
   0x6   :  { %999 = vmatpush3.bf16.msra.mxu1 %v1201_v12  ;;  %1071 = vmatpush3.bf16.msra.mxu0 %v1201_v12  ;;  %v1233_v23 = vpack.c.bf16 %v60_v20, %v57_v19  ;;  %v1254_v30 = vand.u32 4294901760, %v14_v26  ;;  %v1256_v31 = vsub.f32 %v16_v2, %v42_v5  ;;  %v69_v33 = vand.u32 4294901760, %v1245_v27  ;;  %v1296_v43 = vld [vmem:[%s1481_s0 + $0x70] sm:$0xff]  ;;  %v1301_v44 = vld [vmem:[%s1481_s0 + $0x78] sm:$0xff] }
   0x7   :  { %1000 = vmatprep.subr.bf16.mxu1 %v1154_v0  ;;  %1072 = vmatprep.subr.bf16.mxu0 %v1154_v0  ;;  %v1260_v32 = vpack.c.bf16 %v66_v25, %v63_v24  ;;  %v72_v34 = vand.u32 4294901760, %v1250_v28  ;;  %v1276_v37 = vsub.f32 %v17_v3, %v45_v7  ;;  %v1278_v38 = vsub.f32 %v18_v6, %v48_v9 }
   0x8   :  { %v75_v39 = vand.u32 4294901760, %v1267_v35  ;;  %v1282_v40 = vsub.f32 %v14_v26, %v1254_v30  ;;  %v78_v42 = vand.u32 4294901760, %v1274_v36  ;;  %v132_v45 = vand.u32 4294901760, %v1252_v29 }
   0x9   :  { %v1290_v41 = vpack.c.bf16 %v72_v34, %v69_v33  ;;  %v139_v46 = vand.u32 4294901760, %v1256_v31  ;;  %v1307_v47 = vsub.f32 %v19_v10, %v51_v14  ;;  %v1309_v48 = vsub.f32 %v20_v11, %v54_v15 }
   0xa   :  { %1002 = vmatpush3.bf16.msra.mxu1 %v1205_v13  ;;  %1074 = vmatpush3.bf16.msra.mxu0 %v1205_v13  ;;  %v81_v49 = vand.u32 4294901760, %v1296_v43  ;;  %v84_v50 = vand.u32 4294901760, %v1301_v44  ;;  %v121_v51 = vand.u32 4294901760, %v1282_v40  ;;  %v146_v52 = vand.u32 4294901760, %v1276_v37 }
   0xb   :  { %1003 = vmatprep.subr.bf16.mxu1 %v1154_v0  ;;  %1075 = vmatprep.subr.bf16.mxu0 %v1154_v0  ;;  %v1321_v53 = vpack.c.bf16 %v78_v42, %v75_v39  ;;  %v133_v54 = vsub.f32 %v1252_v29, %v132_v45  ;;  %v140_v55 = vsub.f32 %v1256_v31, %v139_v46  ;;  %v153_v56 = vand.u32 4294901760, %v1278_v38 }
   0xc   :  { %v1328_v57 = vsub.f32 %v21_v16, %v57_v19  ;;  %v1330_v58 = vsub.f32 %v22_v17, %v60_v20  ;;  %v122_v59 = vsub.f32 %v1282_v40, %v121_v51  ;;  %v147_v60 = vsub.f32 %v1276_v37, %v146_v52 }
   0xd   :  { %v160_v61 = vand.u32 4294901760, %v1307_v47  ;;  %v167_v62 = vand.u32 4294901760, %v1309_v48  ;;  %v1342_v63 = vpack.c.bf16 %v84_v50, %v81_v49  ;;  %v134_v1 = vand.u32 4294901760, %v133_v54 }
   0xe   :  { %1005 = vmatpush3.bf16.msra.mxu1 %v1217_v18  ;;  %1077 = vmatpush3.bf16.msra.mxu0 %v1217_v18  ;;  %v141_v2 = vand.u32 4294901760, %v140_v55  ;;  %v154_v3 = vsub.f32 %v1278_v38, %v153_v56  ;;  %v1348_v4 = vsub.f32 %v1224_v21, %v63_v24  ;;  %v1351_v5 = vsub.f32 %v1229_v22, %v66_v25 }
   0xf   :  { %1006 = vmatprep.subr.bf16.mxu1 %v1154_v0  ;;  %1078 = vmatprep.subr.bf16.mxu0 %v1154_v0  ;;  %v1094_v6 = vpack.c.bf16 %v139_v46, %v132_v45  ;;  %v123_v7 = vand.u32 4294901760, %v122_v59  ;;  %v148_v9 = vand.u32 4294901760, %v147_v60  ;;  %v161_v10 = vsub.f32 %v1307_v47, %v160_v61 }
  0x10   :  { %v168_v11 = vsub.f32 %v1309_v48, %v167_v62  ;;  %v1022_v14 = vpack.c.bf16 %v141_v2, %v134_v1  ;;  %v155_v15 = vand.u32 4294901760, %v154_v3  ;;  %v174_v16 = vand.u32 4294901760, %v1328_v57 }
  0x11   :  { %v181_v17 = vand.u32 4294901760, %v1330_v58  ;;  %v1364_v19 = vsub.f32 %v1245_v27, %v69_v33  ;;  %v1369_v20 = vsub.f32 %v1250_v28, %v72_v34  ;;  %v1097_v21 = vpack.c.bf16 %v153_v56, %v146_v52 }
  0x12   :  { %1008 = vmatpush3.bf16.msra.mxu1 %v1233_v23  ;;  %1080 = vmatpush3.bf16.msra.mxu0 %v1233_v23  ;;  %v162_v22 = vand.u32 4294901760, %v161_v10  ;;  %v169_v24 = vand.u32 4294901760, %v168_v11  ;;  %v188_v25 = vand.u32 4294901760, %v1348_v4  ;;  %v1025_v26 = vpack.c.bf16 %v155_v15, %v148_v9 }
  0x13   :  { %1009 = vmatprep.subr.bf16.mxu1 %v1154_v0  ;;  %1081 = vmatprep.subr.bf16.mxu0 %v1154_v0  ;;  %v175_v45 = vsub.f32 %v1328_v57, %v174_v16  ;;  %v182_v27 = vsub.f32 %v1330_v58, %v181_v17  ;;  %v195_v33 = vand.u32 4294901760, %v1351_v5  ;;  %v1380_v28 = vsub.f32 %v1267_v35, %v75_v39 }
  0x14   :  { %v1385_v34 = vsub.f32 %v1274_v36, %v78_v42  ;;  %v1028_v46 = vpack.c.bf16 %v169_v24, %v162_v22  ;;  %v189_v52 = vsub.f32 %v1348_v4, %v188_v25  ;;  %v202_v54 = vand.u32 4294901760, %v1364_v19 }
  0x15   :  { %v176_v35 = vand.u32 4294901760, %v175_v45  ;;  %v183_v39 = vand.u32 4294901760, %v182_v27  ;;  %v196_v55 = vsub.f32 %v1351_v5, %v195_v33  ;;  %v209_v36 = vand.u32 4294901760, %v1369_v20 }
  0x16   :  { %1011 = vmatpush3.bf16.msra.mxu1 %v1260_v32  ;;  %1083 = vmatpush3.bf16.msra.mxu0 %v1260_v32  ;;  %v1400_v42 = vsub.f32 %v1296_v43, %v81_v49  ;;  %v1405_v56 = vsub.f32 %v1301_v44, %v84_v50  ;;  %v1103_v59 = vpack.c.bf16 %v181_v17, %v174_v16  ;;  %v190_v60 = vand.u32 4294901760, %v189_v52 }
  0x17   :  { %1012 = vmatprep.subr.bf16.mxu1 %v1154_v0  ;;  %1084 = vmatprep.subr.bf16.mxu0 %v1154_v0  ;;  %v1031_v1 = vpack.c.bf16 %v183_v39, %v176_v35  ;;  %v197_v2 = vand.u32 4294901760, %v196_v55  ;;  %v210_v3 = vsub.f32 %v1369_v20, %v209_v36  ;;  %v223_v43 = vand.u32 4294901760, %v1385_v34 }
  0x18   :  { %v1106_v44 = vpack.c.bf16 %v195_v33, %v188_v25  ;;  %v237_v11 = vand.u32 4294901760, %v1405_v56 }
  0x19   :  { %v211_v9 = vand.u32 4294901760, %v210_v3  ;;  %v224_v10 = vsub.f32 %v1385_v34, %v223_v43 }
  0x1a   :  { %1014 = vmatpush3.bf16.msra.mxu1 %v1290_v41  ;;  %1086 = vmatpush3.bf16.msra.mxu0 %v1290_v41  ;;  %v238_v22 = vsub.f32 %v1405_v56, %v237_v11 }
  0x1b   :  { %1015 = vmatprep.subr.bf16.mxu1 %v1154_v0  ;;  %1087 = vmatprep.subr.bf16.mxu0 %v1154_v0  ;;  %v225_v17 = vand.u32 4294901760, %v224_v10 }
  0x1c   :  { %v239_v45 = vand.u32 4294901760, %v238_v22 }
  0x1e   :  { %1017 = vmatpush3.bf16.msra.mxu1 %v1321_v53  ;;  %1089 = vmatpush3.bf16.msra.mxu0 %v1321_v53 }
  0x1f   :  { %1018 = vmatprep.subr.bf16.mxu1 %v1154_v0  ;;  %1090 = vmatprep.subr.bf16.mxu0 %v1154_v0 }
  0x22   :  { %1020 = vmatpush3.bf16.msra.mxu1 %v1342_v63  ;;  %1092 = vmatpush3.bf16.msra.mxu0 %v1342_v63 }
  0x23   :  { %1021 = vmatprep.subr.bf16.mxu1 %v1154_v0  ;;  %1093 = vmatprep.subr.bf16.mxu0 %v1154_v0 }
  0x25   :  { %820 = vmatmul.mubr.f32.vlgmr.msra.gmra.mrb[0].mxu1 %v123_v7  ;;  %925 = vmatmul.mubr.f32.vlgmr.msra.gmra.mrb[0].mxu0 %v121_v51  ;;  %v1100_v51 = vpack.c.bf16 %v167_v62, %v160_v61  ;;  %v203_v61 = vsub.f32 %v1364_v19, %v202_v54  ;;  %v216_v62 = vand.u32 4294901760, %v1380_v28  ;;  %v1034_v7 = vpack.c.bf16 %v197_v2, %v190_v60 }
  0x26   :  { %1023 = vmatpush3.bf16.msra.mxu1 %v1022_v14  ;;  %1095 = vmatpush3.bf16.msra.mxu0 %v1094_v6  ;;  %v230_v6 = vand.u32 4294901760, %v1400_v42  ;;  %v1109_v14 = vpack.c.bf16 %v209_v36, %v202_v54 }
  0x27   :  { %1024 = vmatprep.subr.bf16.mxu1 %v1154_v0  ;;  %1096 = vmatprep.subr.bf16.mxu0 %v1154_v0  ;;  %v204_v49 = vand.u32 4294901760, %v203_v61  ;;  %v217_v50 = vsub.f32 %v1380_v28, %v216_v62  ;;  %v1112_v25 = vpack.c.bf16 %v223_v43, %v216_v62 }
  0x28   :  { %854 = vmatprep.mubr.msk.f32.mxu1 %vm1155_vm0, %v1156_v8  ;;  %959 = vmatprep.mubr.msk.f32.mxu0 %vm1155_vm0, %v1156_v8  ;;  %v1115_v33 = vpack.c.bf16 %v237_v11, %v230_v6 }
  0x29   :  { %v218_v15 = vand.u32 4294901760, %v217_v50  ;;  %v1037_v16 = vpack.c.bf16 %v211_v9, %v204_v49 }
  0x2a   :  { %1026 = vmatpush3.bf16.msra.mxu1 %v1025_v26  ;;  %1098 = vmatpush3.bf16.msra.mxu0 %v1097_v21  ;;  %v231_v21 = vsub.f32 %v1400_v42, %v230_v6 }
  0x2b   :  { %1027 = vmatprep.subr.bf16.mxu1 %v1154_v0  ;;  %1099 = vmatprep.subr.bf16.mxu0 %v1154_v0  ;;  %v1040_v24 = vpack.c.bf16 %v225_v17, %v218_v15 }
  0x2c   :  { %v232_v26 = vand.u32 4294901760, %v231_v21 }
  0x2e   :  { %1029 = vmatpush3.bf16.msra.mxu1 %v1028_v46  ;;  %1101 = vmatpush3.bf16.msra.mxu0 %v1100_v51  ;;  %v1043_v27 = vpack.c.bf16 %v239_v45, %v232_v26  ;;  %v1046_v46 = vpack.c.bf16 %v1256_v31, %v1252_v29  ;;  %v1049_v51 = vpack.c.bf16 %v1278_v38, %v1276_v37  ;;  %v684_v31 = vld [vmem:[%s1483_s1] ss:$0 sm:$0xff] }
  0x2f   :  { %1030 = vmatprep.subr.bf16.mxu1 %v1154_v0  ;;  %1102 = vmatprep.subr.bf16.mxu0 %v1154_v0  ;;  %v1052_v29 = vpack.c.bf16 %v1309_v48, %v1307_v47 }
  0x32   :  { %1032 = vmatpush3.bf16.msra.mxu1 %v1031_v1  ;;  %1104 = vmatpush3.bf16.msra.mxu0 %v1103_v59 }
  0x33   :  { %1033 = vmatprep.subr.bf16.mxu1 %v1154_v0  ;;  %1105 = vmatprep.subr.bf16.mxu0 %v1154_v0 }
  0x36   :  { %1035 = vmatpush3.bf16.msra.mxu1 %v1034_v7  ;;  %1107 = vmatpush3.bf16.msra.mxu0 %v1106_v44 }
  0x37   :  { %1036 = vmatprep.subr.bf16.mxu1 %v1154_v0  ;;  %1108 = vmatprep.subr.bf16.mxu0 %v1154_v0 }
  0x3a   :  { %1038 = vmatpush3.bf16.msra.mxu1 %v1037_v16  ;;  %1110 = vmatpush3.bf16.msra.mxu0 %v1109_v14 }
  0x3b   :  { %1039 = vmatprep.subr.bf16.mxu1 %v1154_v0  ;;  %1111 = vmatprep.subr.bf16.mxu0 %v1154_v0 }
  0x3e   :  { %1041 = vmatpush3.bf16.msra.mxu1 %v1040_v24  ;;  %1113 = vmatpush3.bf16.msra.mxu0 %v1112_v25 }
  0x3f   :  { %1042 = vmatprep.subr.bf16.mxu1 %v1154_v0  ;;  %1114 = vmatprep.subr.bf16.mxu0 %v1154_v0 }
  0x42   :  { %1044 = vmatpush3.bf16.msra.mxu1 %v1043_v27  ;;  %1116 = vmatpush3.bf16.msra.mxu0 %v1115_v33 }
  0x43   :  { %1045 = vmatprep.subr.bf16.mxu1 %v1154_v0  ;;  %1117 = vmatprep.subr.bf16.mxu0 %v1154_v0 }
  0x45   :  { %855 = vmatmul.mubr.f32.vlgmr.msra.gmra.mrb[0].mxu1 %v1254_v30  ;;  %960 = vmatmul.mubr.f32.vlgmr.msra.gmra.mrb[0].mxu0 %v1254_v30 }
  0x46   :  { %1047 = vmatpush3.bf16.msra.mxu1 %v1046_v46  ;;  %1119 = vmatpush3.bf16.msra.mxu0 %v1201_v12  ;;  %v1055_v12 = vpack.c.bf16 %v1330_v58, %v1328_v57 }
  0x47   :  { %1048 = vmatprep.subr.bf16.mxu1 %v1154_v0  ;;  %1120 = vmatprep.subr.bf16.mxu0 %v1154_v0 }
  0x48   :  { %889 = vmatprep.mubr.msk.f32.mxu1 %vm1155_vm0, %v1156_v8  ;;  %994 = vmatprep.mubr.msk.f32.mxu0 %vm1155_vm0, %v1156_v8  ;;  %v1058_v8 = vpack.c.bf16 %v1351_v5, %v1348_v4 }
  0x4a   :  { %1050 = vmatpush3.bf16.msra.mxu1 %v1049_v51  ;;  %1122 = vmatpush3.bf16.msra.mxu0 %v1205_v13  ;;  %v1061_v13 = vpack.c.bf16 %v1369_v20, %v1364_v19 }
  0x4b   :  { %1051 = vmatprep.subr.bf16.mxu1 %v1154_v0  ;;  %1123 = vmatprep.subr.bf16.mxu0 %v1154_v0 }
  0x4e   :  { %1053 = vmatpush3.bf16.msra.mxu1 %v1052_v29  ;;  %1125 = vmatpush3.bf16.msra.mxu0 %v1217_v18  ;;  %v1064_v18 = vpack.c.bf16 %v1385_v34, %v1380_v28 }
  0x4f   :  { %1054 = vmatprep.subr.bf16.mxu1 %v1154_v0  ;;  %1126 = vmatprep.subr.bf16.mxu0 %v1154_v0 }
  0x52   :  { %1056 = vmatpush3.bf16.msra.mxu1 %v1055_v12  ;;  %1128 = vmatpush3.bf16.msra.mxu0 %v1233_v23  ;;  %v1067_v23 = vpack.c.bf16 %v1405_v56, %v1400_v42 }
  0x53   :  { %1057 = vmatprep.subr.bf16.mxu1 %v1154_v0  ;;  %1129 = vmatprep.subr.bf16.mxu0 %v1154_v0 }
  0x56   :  { %1059 = vmatpush3.bf16.msra.mxu1 %v1058_v8  ;;  %1131 = vmatpush3.bf16.msra.mxu0 %v1260_v32 }
  0x57   :  { %1060 = vmatprep.subr.bf16.mxu1 %v1154_v0  ;;  %1132 = vmatprep.subr.bf16.mxu0 %v1154_v0 }
  0x5a   :  { %1062 = vmatpush3.bf16.msra.mxu1 %v1061_v13  ;;  %1134 = vmatpush3.bf16.msra.mxu0 %v1290_v41 }
  0x5b   :  { %1063 = vmatprep.subr.bf16.mxu1 %v1154_v0  ;;  %1135 = vmatprep.subr.bf16.mxu0 %v1154_v0 }
  0x5e   :  { %1065 = vmatpush3.bf16.msra.mxu1 %v1064_v18  ;;  %1137 = vmatpush3.bf16.msra.mxu0 %v1321_v53 }
  0x5f   :  { %1066 = vmatprep.subr.bf16.mxu1 %v1154_v0  ;;  %1138 = vmatprep.subr.bf16.mxu0 %v1154_v0 }
  0x62   :  { %1068 = vmatpush3.bf16.msra.mxu1 %v1067_v23  ;;  %1140 = vmatpush3.bf16.msra.mxu0 %v1342_v63 }
  0x65   :  { %890 = vmatmul.mubr.f32.vlgmr.msra.gmra.mrb[0].mxu1 %v1282_v40  ;;  %995 = vmatmul.mubr.f32.vlgmr.msra.gmra.mrb[0].mxu0 %v1254_v30 }
 0x138   :  { %v380_v32 = vpop.f32.mrb[0].mxu1  ;;  %v675_v37 = vpop.f32.mrb[0].mxu0 }
 0x139   :  { %v1141_v38 = vadd.f32 %v684_v31, %v380_v32  ;;  %v891_v41 = vpop.f32.mrb[1].mxu1  ;;  %v996_v47 = vpop.f32.mrb[1].mxu0 }
 0x13b   :  { %v1142_v48 = vadd.f32 %v1141_v38, %v675_v37 }
 0x13d   :  { %679 = vst [vmem:[%s1484_s3] sm:$0xff] %v1142_v48 }

</bundles_post_ra>
